<compile_context>
chip_gen: v6e
topology: v6e:2x2x1
jax: 0.10.0
libtpu: 0.0.40
codegen_flags: <defaults>
</compile_context>

<pallas_src>
import numpy as np
import jax
import jax.numpy as jnp
from jax.experimental import pallas as pl
from jax.experimental.pallas import tpu as pltpu


def _round_up(a, b):
    return (a + b - 1) // b * b


def _vmem_budget_bytes():
    """(tile_budget_bytes, vmem_limit_bytes), generation-aware."""
    try:
        cap = pltpu.get_tpu_info().vmem_capacity_bytes
    except Exception:
        cap = 64 * 1024 * 1024  # conservative fallback (v7x-sized VMEM)
    if cap >= 100 * 1024 * 1024:        # v5e / v6e: 128 MiB physical VMEM
        return 48 * 1024 * 1024, 64 * 1024 * 1024
    return 24 * 1024 * 1024, 40 * 1024 * 1024  # v7x: 64 MiB per TensorCore


def _position_weight_kernel(meta_ref, x_ref, o_ref):
    # meta_ref: (TM, 8) f32, columns = [j, aspect_start, aspect_end, text_len, 1/ctx, 0, 0, 0]
    j = meta_ref[:, 0:1]        # sequence position of this row
    s0 = meta_ref[:, 1:2]       # aspect start
    s1 = meta_ref[:, 2:3]       # aspect end (inclusive)
    tl = meta_ref[:, 3:4]       # text length
    inv_ctx = meta_ref[:, 4:5]  # 1 / (text_len - aspect_len)

    before = 1.0 - (s0 - j) * inv_ctx        # j <  s0
    after = 1.0 - (j - s1) * inv_ctx         # s1 < j < tl
    prox = jnp.where(j < s0, before, jnp.where(j <= s1, inv_ctx, after))
    # Reference zeroes everything at/after text_len LAST; keep it outermost so it
    # wins even when s1 >= tl (and for zero-padded out-of-bounds rows).
    prox = jnp.where(j < tl, prox, 0.0)

    # Multiply in f32 (v5e has no bf16 VALU), cast only on store.
    o_ref[...] = (prox * x_ref[...].astype(jnp.float32)).astype(o_ref.dtype)


def position_weight(x, aspect_boundary_indices, text_len, aspect_len, *, row_tile=None):
    """x: (B, S, H); aspect_boundary_indices: (B, 2); text_len, aspect_len: (B,)."""
    B, S, H = x.shape
    R = B * S
    itemsize = x.dtype.itemsize

    # ---- per-row metadata packed into a single (R, 8) f32 array (one DMA stream) ----
    s0 = aspect_boundary_indices[:, 0].astype(jnp.float32)
    s1 = aspect_boundary_indices[:, 1].astype(jnp.float32)
    tl = text_len.astype(jnp.float32)
    al = aspect_len.astype(jnp.float32)
    inv_ctx = 1.0 / (tl - al)   # matches reference semantics (tl == al -> inf/NaN)

    j_row = jnp.tile(jnp.arange(S, dtype=jnp.float32), B)          # (R,)
    rep = lambda v: jnp.repeat(v, S, total_repeat_length=R)        # (R,)
    zeros = jnp.zeros((R,), jnp.float32)
    meta = jnp.stack(
        [j_row, rep(s0), rep(s1), rep(tl), rep(inv_ctx), zeros, zeros, zeros],
        axis=1,
    )                                                              # (R, 8)

    # ---- lane handling: never pad / slice the big x array unless H is tiny & ragged ----
    pad_h = (H % 128 != 0) and (H < 512)
    Hlast = _round_up(H, 128) if pad_h else H
    x2 = x.reshape(R, H)                       # free reshape (contiguous merge)
    if pad_h:
        x2 = jnp.pad(x2, ((0, 0), (0, Hlast - H)))

    # ---- generation- and dtype-aware tile sizing ----
    budget, vmem_limit = _vmem_budget_bytes()
    # Per-row double-buffered VMEM bytes: x in-tile + out-tile (2x each) plus the
    # metadata tile, which is lane-padded to 128 lanes in VMEM.
    bytes_per_row = 2 * 2 * Hlast * itemsize + 2 * 128 * 4
    max_tm = max(8, (budget // bytes_per_row) // 8 * 8)
    tm = min(max_tm, _round_up(R, 8))
    if row_tile is not None:
        tm = min(tm, row_tile)
    # On large problems keep >= ~8 grid steps so both v7x TensorCores get work and
    # the DMA pipeline has iterations to overlap with.
    if R >= 8 * 1024:
        tm = min(tm, _round_up(pl.cdiv(R, 8), 8))
    tm = max(8, (tm // 8) * 8)
    num_steps = pl.cdiv(R, tm)

    # Ragged last row tile of x/out is handled by Pallas (masked boundary stores);
    # only the tiny metadata array is padded so OOB rows get tl=0 -> prox=0.
    Rp = num_steps * tm
    if Rp != R:
        meta = jnp.pad(meta, ((0, Rp - R), (0, 0)))

    x_block = (tm, Hlast)
    block_bytes = tm * Hlast * itemsize
    if block_bytes < (1 << 20) and num_steps >= 4:
        # Narrow tiles: deepen input buffering to hide DMA issue latency.
        x_spec = pl.BlockSpec(x_block, lambda i: (i, 0), pipeline_mode=pl.Buffered(3))
    else:
        x_spec = pl.BlockSpec(x_block, lambda i: (i, 0))
    out_spec = pl.BlockSpec(x_block, lambda i: (i, 0))
    meta_spec = pl.BlockSpec((tm, 8), lambda i: (i, 0))

    cost = pl.CostEstimate(
        flops=int(R) * int(Hlast),
        transcendentals=0,
        bytes_accessed=int(2 * R * Hlast * itemsize + Rp * 8 * 4),
    )

    out = pl.pallas_call(
        _position_weight_kernel,
        out_shape=jax.ShapeDtypeStruct((R, Hlast), x.dtype),
        grid_spec=pltpu.PrefetchScalarGridSpec(
            num_scalar_prefetch=0,
            grid=(num_steps,),
            in_specs=[meta_spec, x_spec],
            out_specs=out_spec,
        ),
        compiler_params=pltpu.CompilerParams(
            dimension_semantics=("parallel",),   # v7x: both TCs split the row tiles
            vmem_limit_bytes=vmem_limit,
        ),
        cost_estimate=cost,
    )(meta, x2)

    if pad_h:
        out = out[:, :H]
    return out.reshape(B, S, H)


def _prox_mat_ref(ab, tl, al, batch_size, seq_len):
    """Pure-numpy port of PositionWeight.prox_mat for verification."""
    prox = np.zeros((batch_size, seq_len), dtype=np.float32)
    for i in range(batch_size):
        context_len = tl[i] - al[i]
        for j in range(ab[i, 0]):
            prox[i, j] = 1 - (ab[i, 0] - j) / context_len
        for j in range(ab[i, 0], ab[i, 1] + 1):
            prox[i, j] = 1 / context_len
        for j in range(ab[i, 1] + 1, tl[i]):
            prox[i, j] = 1 - (j - ab[i, 1]) / context_len
        for j in range(tl[i], seq_len):
            prox[i, j] = 0
    return prox


if __name__ == "__main__":
    B, S, H = 2, 16, 128

    key = jax.random.PRNGKey(0)
    x = jax.random.normal(key, (B, S, H), dtype=jnp.float32)

    # Deterministic metadata: aspect spans [3,5] and [7,9], text lens 12 and 14.
    aspect_boundary_indices = jnp.array([[3, 5], [7, 9]], dtype=jnp.int32)
    text_len = jnp.array([12, 14], dtype=jnp.int32)
    aspect_len = jnp.array([3, 3], dtype=jnp.int32)

    out = position_weight(x, aspect_boundary_indices, text_len, aspect_len)
    out = jax.block_until_ready(out)

    # Verify against the numpy reference semantics of the PyTorch module.
    prox_ref = _prox_mat_ref(np.asarray(aspect_boundary_indices),
                             np.asarray(text_len),
                             np.asarray(aspect_len), B, S)
    expected = prox_ref[:, :, None] * np.asarray(x)
    np.testing.assert_allclose(np.asarray(out), expected, rtol=1e-6, atol=1e-6)

    print("KERNEL_OK")
</pallas_src>

<mosaic_0001>
module attributes {stable_mosaic.version = 11 : i64} {
  func.func @_position_weight_kernel(%arg0: i32, %arg1: memref<32x8xf32, #tpu.memory_space<vmem>>, %arg2: memref<32x128xf32, #tpu.memory_space<vmem>>, %arg3: memref<32x128xf32, #tpu.memory_space<vmem>>) attributes {dimension_semantics = [#tpu.dimension_semantics<parallel>], iteration_bounds = array<i64: 1>, scalar_prefetch = 0 : i64, scratch_operands = 0 : i64, tpu.core_type = #tpu.core_type<tc>, window_params = [{transform_indices = @transform_0, window_bounds = array<i64: 32, 8>}, {transform_indices = @transform_1, window_bounds = array<i64: 32, 128>}, {transform_indices = @transform_2, window_bounds = array<i64: 32, 128>}]} {
    %c0 = arith.constant 0 : index
    %c0_0 = arith.constant 0 : index
    %0 = vector.load %arg1[%c0, %c0_0] : memref<32x8xf32, #tpu.memory_space<vmem>>, vector<32x1xf32>
    %c0_1 = arith.constant 0 : index
    %c1 = arith.constant 1 : index
    %1 = vector.load %arg1[%c0_1, %c1] : memref<32x8xf32, #tpu.memory_space<vmem>>, vector<32x1xf32>
    %c0_2 = arith.constant 0 : index
    %c2 = arith.constant 2 : index
    %2 = vector.load %arg1[%c0_2, %c2] : memref<32x8xf32, #tpu.memory_space<vmem>>, vector<32x1xf32>
    %c0_3 = arith.constant 0 : index
    %c3 = arith.constant 3 : index
    %3 = vector.load %arg1[%c0_3, %c3] : memref<32x8xf32, #tpu.memory_space<vmem>>, vector<32x1xf32>
    %c0_4 = arith.constant 0 : index
    %c4 = arith.constant 4 : index
    %4 = vector.load %arg1[%c0_4, %c4] : memref<32x8xf32, #tpu.memory_space<vmem>>, vector<32x1xf32>
    %5 = arith.subf %1, %0 : vector<32x1xf32>
    %6 = arith.mulf %5, %4 : vector<32x1xf32>
    %cst = arith.constant 1.000000e+00 : f32
    %7 = vector.broadcast %cst : f32 to vector<32x1xf32>
    %8 = arith.subf %7, %6 : vector<32x1xf32>
    %9 = arith.subf %0, %2 : vector<32x1xf32>
    %10 = arith.mulf %9, %4 : vector<32x1xf32>
    %cst_5 = arith.constant 1.000000e+00 : f32
    %11 = vector.broadcast %cst_5 : f32 to vector<32x1xf32>
    %12 = arith.subf %11, %10 : vector<32x1xf32>
    %13 = arith.cmpf olt, %0, %1 : vector<32x1xf32>
    %14 = arith.cmpf ole, %0, %2 : vector<32x1xf32>
    %15 = arith.select %14, %4, %12 : vector<32x1xi1>, vector<32x1xf32>
    %16 = arith.select %13, %8, %15 : vector<32x1xi1>, vector<32x1xf32>
    %17 = arith.cmpf olt, %0, %3 : vector<32x1xf32>
    %cst_6 = arith.constant 0.000000e+00 : f32
    %18 = vector.broadcast %cst_6 : f32 to vector<32x1xf32>
    %19 = arith.select %17, %16, %18 : vector<32x1xi1>, vector<32x1xf32>
    %c0_7 = arith.constant 0 : index
    %c0_8 = arith.constant 0 : index
    %20 = vector.load %arg2[%c0_7, %c0_8] : memref<32x128xf32, #tpu.memory_space<vmem>>, vector<32x128xf32>
    %21 = vector.broadcast %19 : vector<32x1xf32> to vector<32x128xf32>
    %22 = arith.mulf %21, %20 : vector<32x128xf32>
    %c0_9 = arith.constant 0 : index
    %c0_10 = arith.constant 0 : index
    %23 = vector.load %arg3[%c0_9, %c0_10] : memref<32x128xf32, #tpu.memory_space<vmem>>, vector<32x128xf32>
    tpu.vector_store %arg3[%c0_9, %c0_10], %22 {strides = array<i32>} : memref<32x128xf32, #tpu.memory_space<vmem>>, vector<32x128xf32>,
    return
  }
  func.func @transform_0(%arg0: i32) -> (i32, i32) {
    %c0_i32 = arith.constant 0 : i32
    %c0_i32_0 = arith.constant 0 : i32
    return %arg0, %c0_i32 : i32, i32
  }
  func.func @transform_1(%arg0: i32) -> (i32, i32) {
    %c0_i32 = arith.constant 0 : i32
    %c0_i32_0 = arith.constant 0 : i32
    return %arg0, %c0_i32 : i32, i32
  }
  func.func @transform_2(%arg0: i32) -> (i32, i32) {
    %c0_i32 = arith.constant 0 : i32
    %c0_i32_0 = arith.constant 0 : i32
    return %arg0, %c0_i32 : i32, i32
  }
}

</mosaic_0001>

<bundles_post_ra>
// kernel: tpu_custom_call.1
= control target key start
LH: loop header
LB: loop body
LE: loop exit
PB: predicated region body
PF: predicated region fallthrough
CT: control target
= control target key end

     0   :  { %s225_s13 = smov 1   ;;  %s342_s0 = inlined_call_operand.vmem [shape: f32[32,8], index: 0, kind: input, shape index: {}]   ;;  %s343_s1 = inlined_call_operand.vmem [shape: f32[32,128], index: 1, kind: input, shape index: {}]   ;;  %s344_s2 = inlined_call_operand.hbm [shape: f32[32,128], index: 2, kind: output, shape index: {}]  }
   0x1   :  { %v252_v0 = vld [vmem:[%s342_s0 + $0x10] sm:$0xff]  ;;  %v257_v1 = vld [vmem:[%s342_s0] sm:$0xff] }
   0x2   :  { %24 = vrot.lane.b32.xlu1 %v252_v0, %s225_s13  ;;  %20 = vrot.lane.b32.xlu0 %v257_v1, %s225_s13 }
   0x3   :  { %7 = vsyncpa [#allocation3], 0  ;;  %v264_v2 = vld [vmem:[%s342_s0 + $0x18] sm:$0xff]  ;;  %v269_v3 = vld [vmem:[%s342_s0 + $0x8] sm:$0xff]  ;;  %s226_s18 = smov 125   ;;  %s227_s19 = smov 126  }
   0x4   :  { %s228_s0 = smov 124   ;;  %s229_s20 = smov 127   ;;  %v230_v6 = vmov 0  }
   0x5   :  { %202 = vset.pattern.permute.xlu1 %v230_v6  ;;  %201 = vset.pattern.permute.xlu0 %v230_v6  ;;  %s231_s25 = smov [#allocation2]  }
   0x6   :  { %26 = vrot.lane.b32.xlu1 %v264_v2, %s225_s13  ;;  %22 = vrot.lane.b32.xlu0 %v269_v3, %s225_s13  ;;  %s181_s26 = sshll.u32 %s231_s25, 4  ;;  %s182_s26 = int_to_ptr.vmem [resolvable:$true] %s181_s26 }
   0x7   :  { %s203_s3 = scalar_lea.vmem %s182_s26, 512  ;;  %p208_p1 = scmp.lt.s32.totalorder %s182_s26, %s182_s26 }
   0x8   :  { %p204_p0 = scmp.ne.s32.totalorder %s182_s26, %s203_s3  ;;  %p209_p2 = scmp.lt.s32.totalorder %s203_s3, %s203_s3 }
   0xa   :  { %38 = vrot.lane.b32.xlu1 %v269_v3, %s226_s18  ;;  %36 = vrot.lane.b32.xlu0 %v257_v1, %s226_s18  ;;  %p210_p3 = por %p209_p2, %p208_p1 }
   0xc   :  { %p211_p4 = pnand %p210_p3, %p204_p0 }
   0xe   :  { %42 = vrot.lane.b32.xlu1 %v264_v2, %s226_s18  ;;  %40 = vrot.lane.b32.xlu0 %v252_v0, %s226_s18 }
  0x12   :  { %58 = vrot.lane.b32.xlu1 %v269_v3, %s227_s19  ;;  %56 = vrot.lane.b32.xlu0 %v257_v1, %s227_s19 }
  0x16   :  { %62 = vrot.lane.b32.xlu1 %v264_v2, %s227_s19  ;;  %60 = vrot.lane.b32.xlu0 %v252_v0, %s227_s19 }
  0x1a   :  { %74 = vrot.lane.b32.xlu1 %v269_v3, %s228_s0  ;;  %72 = vrot.lane.b32.xlu0 %v257_v1, %s228_s0 }
  0x1e   :  { %78 = vrot.lane.b32.xlu1 %v264_v2, %s228_s0  ;;  %76 = vrot.lane.b32.xlu0 %v252_v0, %s228_s0 }
  0x22   :  { %94 = vrot.lane.b32.xlu1 %v269_v3, %s229_s20  ;;  %92 = vrot.lane.b32.xlu0 %v257_v1, %s229_s20 }
  0x26   :  { %98 = vrot.lane.b32.xlu1 %v264_v2, %s229_s20  ;;  %96 = vrot.lane.b32.xlu0 %v252_v0, %s229_s20 }
  0x74   :  { %v25_v4 = vpop.permute.xlu1 %24  ;;  %v21_v5 = vpop.permute.xlu0 %20 }
  0x75   :  { %v32_v9 = vsub.f32 %v257_v1, %v21_v5  ;;  %v34_v15 = vsub.f32 %v252_v0, %v25_v4 }
  0x78   :  { %v27_v7 = vpop.permute.xlu1 %26  ;;  %v23_v8 = vpop.permute.xlu0 %22 }
  0x79   :  { %v33_v10 = vsub.f32 %v269_v3, %v23_v8  ;;  %v35_v16 = vsub.f32 %v264_v2, %v27_v7  ;;  %v147_v8 = vld [vmem:[%s343_s1 + $0x18] sm:$0xff] }
  0x7c   :  { %v39_v11 = vpop.permute.xlu1 %38  ;;  %v37_v12 = vpop.permute.xlu0 %36 }
  0x7d   :  { %v49_v13 = vmul.f32 %v39_v11, %v33_v10  ;;  %v48_v14 = vmul.f32 %v37_v12, %v32_v9  ;;  %vm137_vm2 = vcmp.lt.f32.partialorder %v269_v3, %v39_v11  ;;  %vm136_vm6 = vcmp.lt.f32.partialorder %v257_v1, %v37_v12 }
  0x7f   :  { %v53_v17 = vsub.f32 1.0, %v49_v13  ;;  %v52_v18 = vsub.f32 1.0, %v48_v14 }
  0x80   :  { %v297_v19 = vpop.permute.xlu1 %42  ;;  %v299_v20 = vpop.permute.xlu0 %40 }
  0x81   :  { %v51_v21 = vmul.f32 %v297_v19, %v35_v16  ;;  %v50_v22 = vmul.f32 %v299_v20, %v34_v15  ;;  %122 = vrot.lane.b32.xlu1 %v53_v17, %s229_s20  ;;  %120 = vrot.lane.b32.xlu0 %v52_v18, %s229_s20  ;;  %vm139_vm9 = vcmp.lt.f32.partialorder %v264_v2, %v297_v19 }
  0x82   :  { %vm138_vm11 = vcmp.lt.f32.partialorder %v252_v0, %v299_v20 }
  0x83   :  { %v55_v23 = vsub.f32 1.0, %v51_v21  ;;  %v54_v24 = vsub.f32 1.0, %v50_v22 }
  0x84   :  { %v59_v25 = vpop.permute.xlu1 %58  ;;  %v57_v26 = vpop.permute.xlu0 %56 }
  0x85   :  { %126 = vrot.lane.b32.xlu1 %v55_v23, %s229_s20  ;;  %124 = vrot.lane.b32.xlu0 %v54_v24, %s229_s20  ;;  %v69_v33 = vsub.f32 %v269_v3, %v59_v25  ;;  %v68_v35 = vsub.f32 %v257_v1, %v57_v26  ;;  %vm109_vm0 = vcmp.le.f32.partialorder %v269_v3, %v59_v25 }
  0x86   :  { %vm108_vm1 = vcmp.le.f32.partialorder %v257_v1, %v57_v26 }
  0x88   :  { %v63_v27 = vpop.permute.xlu1 %62  ;;  %v61_v28 = vpop.permute.xlu0 %60 }
  0x89   :  { %v71_v37 = vsub.f32 %v264_v2, %v63_v27  ;;  %v70_v39 = vsub.f32 %v252_v0, %v61_v28  ;;  %vm111_vm3 = vcmp.le.f32.partialorder %v264_v2, %v63_v27  ;;  %vm110_vm7 = vcmp.le.f32.partialorder %v252_v0, %v61_v28 }
  0x8c   :  { %v75_v29 = vpop.permute.xlu1 %74  ;;  %v73_v30 = vpop.permute.xlu0 %72 }
  0x8d   :  { %v85_v38 = vmul.f32 %v75_v29, %v69_v33  ;;  %v84_v40 = vmul.f32 %v73_v30, %v68_v35 }
  0x8f   :  { %v89_v43 = vsub.f32 1.0, %v85_v38  ;;  %v88_v45 = vsub.f32 1.0, %v84_v40 }
  0x90   :  { %v79_v31 = vpop.permute.xlu1 %78  ;;  %v77_v32 = vpop.permute.xlu0 %76 }
  0x91   :  { %v87_v44 = vmul.f32 %v79_v31, %v71_v37  ;;  %v86_v46 = vmul.f32 %v77_v32, %v70_v39  ;;  %v113_v47 = vsel %vm109_vm0, %v75_v29, %v89_v43  ;;  %v112_v50 = vsel %vm108_vm1, %v73_v30, %v88_v45 }
  0x93   :  { %v91_v48 = vsub.f32 1.0, %v87_v44  ;;  %v90_v51 = vsub.f32 1.0, %v86_v46 }
  0x94   :  { %v95_v34 = vpop.permute.xlu1 %94  ;;  %v93_v36 = vpop.permute.xlu0 %92 }
  0x95   :  { %vm105_vm4 = vcmp.lt.f32.partialorder %v269_v3, %v95_v34  ;;  %vm104_vm5 = vcmp.lt.f32.partialorder %v257_v1, %v93_v36  ;;  %v115_v57 = vsel %vm111_vm3, %v79_v31, %v91_v48  ;;  %v114_v59 = vsel %vm110_vm7, %v77_v32, %v90_v51  ;;  %v145_v3 = vld [vmem:[%s343_s1 + $0x8] sm:$0xff] }
  0x98   :  { %v99_v41 = vpop.permute.xlu1 %98  ;;  %v97_v42 = vpop.permute.xlu0 %96 }
  0x99   :  { %vm107_vm8 = vcmp.lt.f32.partialorder %v264_v2, %v99_v41  ;;  %vm106_vm10 = vcmp.lt.f32.partialorder %v252_v0, %v97_v42  ;;  %v144_v2 = vld [vmem:[%s343_s1] sm:$0xff]  ;;  %v146_v0 = vld [vmem:[%s343_s1 + $0x10] sm:$0xff] }
  0xf3   :  { %v123_v49 = vpop.permute.xlu1 %122  ;;  %v121_v53 = vpop.permute.xlu0 %120 }
  0xf4   :  { %v133_v52 = vsel %vm105_vm4, %v123_v49, %v113_v47  ;;  %v132_v54 = vsel %vm104_vm5, %v121_v53, %v112_v50 }
  0xf5   :  { %v141_v55 = vsel %vm137_vm2, %v133_v52, 0.0  ;;  %v140_v56 = vsel %vm136_vm6, %v132_v54, 0.0 }
  0xf6   :  { %155 = vperm.xlu1 %202, %v141_v55   ;;  %150 = vperm.xlu0 %201, %v140_v56  }
  0xf7   :  { %v127_v58 = vpop.permute.xlu1 %126  ;;  %v125_v61 = vpop.permute.xlu0 %124 }
  0xf8   :  { %v135_v60 = vsel %vm107_vm8, %v127_v58, %v115_v57  ;;  %v134_v62 = vsel %vm106_vm10, %v125_v61, %v114_v59 }
  0xf9   :  { %v143_v63 = vsel %vm139_vm9, %v135_v60, 0.0  ;;  %v142_v1 = vsel %vm138_vm11, %v134_v62, 0.0 }
  0xfa   :  { %165 = vperm.xlu0 %201, %v143_v63   ;;  %160 = vperm.xlu1 %202, %v142_v1  }
 0x171   :  { %v156_v4 = vpop.permute.xlu1 %155  ;;  %v151_v6 = vpop.permute.xlu0 %150 }
 0x172   :  { %v169_v5 = vmul.f32 %v156_v4, %v145_v3  ;;  %v168_v7 = vmul.f32 %v151_v6, %v144_v2 }
 0x174   :  { %173 = vst [vmem:[#allocation2 + $0x8] sm:$0xff] %v169_v5  ;;  %172 = vst [vmem:[#allocation2] sm:$0xff] %v168_v7 }
 0x175   :  { %v161_v9 = vpop.permute.xlu1 %160  ;;  %v166_v10 = vpop.permute.xlu0 %165 }
 0x176   :  { %v170_v11 = vmul.f32 %v161_v9, %v146_v0  ;;  %v171_v12 = vmul.f32 %v166_v10, %v147_v8 }
 0x178   :  { %174 = vst [vmem:[#allocation2 + $0x10] sm:$0xff] %v170_v11  ;;  %175 = vst [vmem:[#allocation2 + $0x18] sm:$0xff] %v171_v12 }
 0x179   :  { %214 = shalt.err (!%p211_p4)
}
 0x17a   :  { %s232_s4 = smov 128   ;;  %s233_s5 = smov 8  }
 0x17b   :  { %187 = dma.vmem_to_hbm [thread:$0]  %s182_s26, 512, %s344_s2, [#allocation3], %s232_s4, %s232_s4, %s233_s5  }
 0x17c   :  { %223 = dma.done.wait [#allocation3], 512  }
 0x17d   :  { %224 = vsyncadd [#allocation3], 4294966784 }
 0x17e   :  { %191 = vsyncpa [#allocation3], 1 }

</bundles_post_ra>
